<compile_context>
chip_gen: v5e
topology: v5e:2x2
jax: 0.10.0
libtpu: 0.0.40
codegen_flags: <defaults>
</compile_context>

<pallas_src>
import jax
import jax.numpy as jnp
from jax.experimental import pallas as pl
from jax.experimental.pallas import tpu as pltpu


def _fused_matmul_kernel(x_ref, w_ref, o_ref):
    # x_ref: (TM, KC)  bf16 im2col row tile
    # w_ref: (KC, D)   bf16 fused conv*dense weight (resident across the grid)
    # o_ref: (TM, D)   f32 output tile
    o_ref[...] = jnp.dot(
        x_ref[...], w_ref[...], preferred_element_type=jnp.float32
    ).astype(o_ref.dtype)


def location_layer_forward(attention_cat, w_conv, w_dense, *, tm=512):
    """attention_cat: [B, 2, T] (PyTorch NCW input)
       w_conv:  [F, 2, K]   (PyTorch Conv1d weight layout)
       w_dense: [D, F]      (PyTorch Linear weight layout)
       returns  [B, T, D]
    """
    B, Cin, T = attention_cat.shape
    F_, _, K = w_conv.shape
    D, _ = w_dense.shape
    pad = (K - 1) // 2
    KC = K * Cin

    # --- fold conv + dense into a single linear map (bf16 for the MXU) ---
    # W_fused[k*Cin + c, d] = sum_f w_conv[f, c, k] * w_dense[d, f]
    w_fused = jnp.einsum("fck,df->kcd", w_conv, w_dense).reshape(KC, D)
    w_fused = w_fused.astype(jnp.bfloat16)

    # --- im2col the padded input in bf16, channel-minor -> (B*T, K*Cin) ---
    x_bf = attention_cat.astype(jnp.bfloat16)
    x_pad = jnp.pad(x_bf, ((0, 0), (0, 0), (pad, pad)))      # [B, Cin, T+K-1]
    x_pad = jnp.transpose(x_pad, (0, 2, 1))                  # [B, T+K-1, Cin]
    x_col = jnp.concatenate(
        [x_pad[:, k:k + T, :] for k in range(K)], axis=-1)   # [B, T, K*Cin]
    x_col = x_col.reshape(B * T, KC)                         # [M, KC]

    # --- row tiling: pad M to a whole number of tiles (bf16 sublanes = 16) ---
    M = B * T
    TM = min(tm, ((M + 15) // 16) * 16)
    M_pad = ((M + TM - 1) // TM) * TM
    if M_pad != M:
        x_col = jnp.pad(x_col, ((0, M_pad - M), (0, 0)))

    cost = pl.CostEstimate(
        flops=2 * M_pad * KC * D,
        bytes_accessed=x_col.size * 2 + w_fused.size * 2 + M_pad * D * 4,
        transcendentals=0)

    out = pl.pallas_call(
        _fused_matmul_kernel,
        out_shape=jax.ShapeDtypeStruct((M_pad, D), jnp.float32),
        grid_spec=pltpu.PrefetchScalarGridSpec(
            num_scalar_prefetch=0,
            grid=(M_pad // TM,),
            in_specs=[
                pl.BlockSpec((TM, KC), lambda i: (i, 0)),    # streamed row tiles
                pl.BlockSpec((KC, D), lambda i: (0, 0)),     # weight stays resident
            ],
            out_specs=pl.BlockSpec((TM, D), lambda i: (i, 0)),
        ),
        compiler_params=pltpu.CompilerParams(
            dimension_semantics=("parallel",)),              # shards tiles on v7x
        cost_estimate=cost,
    )(x_col, w_fused)

    return out[:M].reshape(B, T, D).astype(attention_cat.dtype)


def _reference(attention_cat, w_conv, w_dense):
    """Pure-JAX fp32 reference mirroring the PyTorch forward."""
    pad = (w_conv.shape[-1] - 1) // 2
    conv = jax.lax.conv_general_dilated(
        attention_cat, w_conv,
        window_strides=(1,), padding=[(pad, pad)],
        dimension_numbers=("NCH", "OIH", "NCH"))              # [B, F, T]
    return jnp.einsum("bft,df->btd", conv, w_dense)           # [B, T, D]


if __name__ == "__main__":
    # small, module-consistent shapes
    B, T = 2, 48
    attention_dim = 16          # D
    attention_n_filters = 32    # F
    attention_kernel_size = 31  # K

    key = jax.random.PRNGKey(0)
    k_x, k_conv, k_dense = jax.random.split(key, 3)

    # deterministic parameter init (xavier-uniform style)
    fan_conv = 2 * attention_kernel_size + attention_n_filters * attention_kernel_size
    limit_conv = (6.0 / fan_conv) ** 0.5
    w_conv = jax.random.uniform(
        k_conv, (attention_n_filters, 2, attention_kernel_size),
        minval=-limit_conv, maxval=limit_conv, dtype=jnp.float32)

    gain_tanh = 5.0 / 3.0
    limit_dense = gain_tanh * (6.0 / (attention_n_filters + attention_dim)) ** 0.5
    w_dense = jax.random.uniform(
        k_dense, (attention_dim, attention_n_filters),
        minval=-limit_dense, maxval=limit_dense, dtype=jnp.float32)

    attention_cat = jax.random.normal(k_x, (B, 2, T), dtype=jnp.float32)

    out = location_layer_forward(attention_cat, w_conv, w_dense)
    out = jax.block_until_ready(out)

    ref = _reference(attention_cat, w_conv, w_dense)
    assert out.shape == (B, T, attention_dim)
    # bf16 matmul inputs -> looser tolerance than the fp32 path
    assert jnp.allclose(out, ref, atol=2e-2, rtol=2e-2), "mismatch vs reference"

    print("KERNEL_OK")
</pallas_src>

<mosaic_0001>
module attributes {stable_mosaic.version = 11 : i64} {
  func.func @_fused_matmul_kernel(%arg0: i32, %arg1: memref<96x62xbf16, #tpu.memory_space<vmem>>, %arg2: memref<62x16xbf16, #tpu.memory_space<vmem>>, %arg3: memref<96x16xf32, #tpu.memory_space<vmem>>) attributes {dimension_semantics = [#tpu.dimension_semantics<parallel>], iteration_bounds = array<i64: 1>, scalar_prefetch = 0 : i64, scratch_operands = 0 : i64, tpu.core_type = #tpu.core_type<tc>, window_params = [{transform_indices = @transform_0, window_bounds = array<i64: 96, 62>}, {pipeline_mode = #tpu.pipeline_mode<synchronous>, transform_indices = @transform_1, window_bounds = array<i64: 62, 16>}, {transform_indices = @transform_2, window_bounds = array<i64: 96, 16>}]} {
    %c0 = arith.constant 0 : index
    %c0_0 = arith.constant 0 : index
    %0 = vector.load %arg1[%c0, %c0_0] : memref<96x62xbf16, #tpu.memory_space<vmem>>, vector<96x62xbf16>
    %c0_1 = arith.constant 0 : index
    %c0_2 = arith.constant 0 : index
    %1 = vector.load %arg2[%c0_1, %c0_2] : memref<62x16xbf16, #tpu.memory_space<vmem>>, vector<62x16xbf16>
    %cst = arith.constant dense<0.000000e+00> : vector<96x16xf32>
    %2 = tpu.matmul %0, %1, %cst {dimension_numbers = #tpu.dot_dimension_numbers<[1], [0], [0], [1], [0, 0, 1, 1], [], []>} : vector<96x62xbf16>, vector<62x16xbf16>, vector<96x16xf32> -> vector<96x16xf32>
    %c0_3 = arith.constant 0 : index
    %c0_4 = arith.constant 0 : index
    %3 = vector.load %arg3[%c0_3, %c0_4] : memref<96x16xf32, #tpu.memory_space<vmem>>, vector<96x16xf32>
    tpu.vector_store %arg3[%c0_3, %c0_4], %2 {strides = array<i32>} : memref<96x16xf32, #tpu.memory_space<vmem>>, vector<96x16xf32>,
    return
  }
  func.func @transform_0(%arg0: i32) -> (i32, i32) {
    %c0_i32 = arith.constant 0 : i32
    %c0_i32_0 = arith.constant 0 : i32
    return %arg0, %c0_i32 : i32, i32
  }
  func.func @transform_1(%arg0: i32) -> (i32, i32) {
    %c0_i32 = arith.constant 0 : i32
    %c0_i32_0 = arith.constant 0 : i32
    %c0_i32_1 = arith.constant 0 : i32
    return %c0_i32, %c0_i32_0 : i32, i32
  }
  func.func @transform_2(%arg0: i32) -> (i32, i32) {
    %c0_i32 = arith.constant 0 : i32
    %c0_i32_0 = arith.constant 0 : i32
    return %arg0, %c0_i32 : i32, i32
  }
}

</mosaic_0001>

<bundles_post_ra>
// kernel: tpu_custom_call.1
= control target key start
LH: loop header
LB: loop body
LE: loop exit
PB: predicated region body
PF: predicated region fallthrough
CT: control target
= control target key end

     0   :  { %vm104_vm0 = vcmask 1046528   ;;  %vm85_vm1 = vcmask 506880   ;;  %vm147_vm2 = vcmask 130048   ;;  %s328_s1 = inlined_call_operand.vmem [shape: bf16[62,16], index: 1, kind: input, shape index: {}]   ;;  %s329_s0 = inlined_call_operand.vmem [shape: bf16[96,62], index: 0, kind: input, shape index: {}]   ;;  %s330_s2 = inlined_call_operand.vmem [shape: f32[96,16], index: 2, kind: output, shape index: {}]  }
   0x1   :  { %v202_v0 = vld [vmem:[%s328_s1 + $0x18] sm:$0xf]  ;;  %v219_v1 = vld [vmem:[%s328_s1 + $0x18] sm:$0x70]  ;;  %v218_v4 = vld [vmem:[%s328_s1 + $0x10] sm:$0xff] }
   0x2   :  { %v203_v2 = vor.u32 %v219_v1, %v202_v0  ;;  %v217_v5 = vld [vmem:[%s328_s1 + $0x8] sm:$0xff]  ;;  %v216_v6 = vld [vmem:[%s328_s1] sm:$0xff]  ;;  %v213_v9 = vld [vmem:[%s329_s0 + $0x18] sm:$0xff] }
   0x3   :  { %v211_v7 = vld [vmem:[%s329_s0 + $0x8] sm:$0xff]  ;;  %v214_v8 = vld [vmem:[%s329_s0 + $0x20] sm:$0xff]  ;;  %v212_v11 = vld [vmem:[%s329_s0 + $0x10] sm:$0xff] }
   0x4   :  { %v106_v3 = vsel %vm104_vm0, %v203_v2, 0  ;;  %v210_v10 = vld [vmem:[%s329_s0] sm:$0xff]  ;;  %v215_v12 = vld [vmem:[%s329_s0 + $0x28] sm:$0xff] }
   0x5   :  { %220 = vmatpush.bf16.msra.mxu1 %v106_v3  ;;  %222 = vmatpush.bf16.msra.mxu3 %v106_v3 }
   0x6   :  { %221 = vmatpush.bf16.msra.mxu2 %v106_v3  ;;  %112 = vmatpush.bf16.msra.mxu0 %v106_v3 }
   0x9   :  { %223 = vmatpush.bf16.msra.mxu1 %v218_v4  ;;  %225 = vmatpush.bf16.msra.mxu3 %v218_v4 }
   0xa   :  { %224 = vmatpush.bf16.msra.mxu2 %v218_v4  ;;  %113 = vmatpush.bf16.msra.mxu0 %v218_v4 }
   0xd   :  { %226 = vmatpush.bf16.msra.mxu1 %v217_v5  ;;  %228 = vmatpush.bf16.msra.mxu3 %v217_v5 }
   0xe   :  { %227 = vmatpush.bf16.msra.mxu2 %v217_v5  ;;  %114 = vmatpush.bf16.msra.mxu0 %v217_v5 }
  0x11   :  { %229 = vmatpush.bf16.msra.mxu1 %v216_v6  ;;  %231 = vmatpush.bf16.msra.mxu3 %v216_v6 }
  0x12   :  { %230 = vmatpush.bf16.msra.mxu2 %v216_v6  ;;  %115 = vmatpush.bf16.msra.mxu0 %v216_v6 }
  0x14   :  { %205 = vmatmul.msk.bf16.vlgmr.msra.gmra.mxu1 %vm85_vm1, %v211_v7  ;;  %208 = vmatmul.msk.bf16.vlgmr.msra.gmra.mxu3 %vm85_vm1, %v214_v8 }
  0x15   :  { %207 = vmatmul.msk.bf16.vlgmr.msra.gmra.mxu2 %vm85_vm1, %v213_v9  ;;  %204 = vmatmul.msk.bf16.vlgmr.msra.gmra.mxu0 %vm85_vm1, %v210_v10 }
  0x24   :  { %206 = vmatmul.msk.bf16.gmra.mxu1 %vm85_vm1, %v212_v11  ;;  %209 = vmatmul.msk.bf16.gmra.mxu3 %vm85_vm1, %v215_v12 }
  0x91   :  { %v122_v13 = vpop.f32.mrf.mxu1 }
  0x92   :  { %150 = vst.msk [vmem:[%s330_s2 + $0x10] sm:$0xff] %vm147_vm2, %v122_v13  ;;  %v117_v14 = vpop.f32.mrf.mxu0 }
  0x93   :  { %148 = vst.msk [vmem:[%s330_s2] sm:$0xff] %vm147_vm2, %v117_v14 }
  0x97   :  { %v137_v15 = vpop.f32.mrf.mxu3 }
  0x98   :  { %156 = vst.msk [vmem:[%s330_s2 + $0x40] sm:$0xff] %vm147_vm2, %v137_v15  ;;  %v132_v16 = vpop.f32.mrf.mxu2 }
  0x99   :  { %v124_v17 = vpop.f32.mrf.mxu1  ;;  %154 = vst.msk [vmem:[%s330_s2 + $0x30] sm:$0xff] %vm147_vm2, %v132_v16 }
  0x9a   :  { %151 = vst.msk [vmem:[%s330_s2 + $0x18] sm:$0xff] %vm147_vm2, %v124_v17  ;;  %v119_v18 = vpop.f32.mrf.mxu0 }
  0x9b   :  { %149 = vst.msk [vmem:[%s330_s2 + $0x8] sm:$0xff] %vm147_vm2, %v119_v18 }
  0x9f   :  { %v139_v19 = vpop.f32.mrf.mxu3 }
  0xa0   :  { %157 = vst.msk [vmem:[%s330_s2 + $0x48] sm:$0xff] %vm147_vm2, %v139_v19  ;;  %v134_v20 = vpop.f32.mrf.mxu2 }
  0xa1   :  { %v127_v21 = vpop.f32.mrf.mxu1  ;;  %155 = vst.msk [vmem:[%s330_s2 + $0x38] sm:$0xff] %vm147_vm2, %v134_v20 }
  0xa2   :  { %152 = vst.msk [vmem:[%s330_s2 + $0x20] sm:$0xff] %vm147_vm2, %v127_v21 }
  0xa7   :  { %v142_v22 = vpop.f32.mrf.mxu3 }
  0xa8   :  { %158 = vst.msk [vmem:[%s330_s2 + $0x50] sm:$0xff] %vm147_vm2, %v142_v22 }
  0xa9   :  { %v129_v23 = vpop.f32.mrf.mxu1 }
  0xaa   :  { %153 = vst.msk [vmem:[%s330_s2 + $0x28] sm:$0xff] %vm147_vm2, %v129_v23 }
  0xaf   :  { %v144_v24 = vpop.f32.mrf.mxu3 }
  0xb0   :  { %159 = vst.msk [vmem:[%s330_s2 + $0x58] sm:$0xff] %vm147_vm2, %v144_v24 }

</bundles_post_ra>
